<compile_context>
chip_gen: v5e
topology: v5e:2x2
jax: 0.10.0
libtpu: 0.0.40
codegen_flags: <defaults>
</compile_context>

<pallas_src>
import functools

import jax
import jax.numpy as jnp
from jax.experimental import pallas as pl
from jax.experimental.pallas import tpu as pltpu

_LANE = 128
_SUBLANE = 8


def _round_up(x, m):
    return ((x + m - 1) // m) * m


def actor_kernel(x_ref, w1_ref, w2_ref, w3_ref, w4_ref, b_ref, out_ref):
    """One batch tile of the 4-layer actor MLP. All lane dims pre-padded to 128."""
    mid_p = w2_ref.shape[0]        # padded hidden width (multiple of 128)
    act_p = w4_ref.shape[1]        # padded output width (multiple of 128)
    cdt = w1_ref.dtype             # MXU compute dtype (bf16 by default)

    b = b_ref[...]                 # (8, Lmax) f32, rows 0..3 = b1..b4
    b1 = b[0:1, :mid_p]
    b2 = b[1:2, :mid_p]
    b3 = b[2:3, :mid_p]
    b4 = b[3:4, :act_p]

    # Layer 1: Linear + ReLU
    h = jnp.dot(x_ref[...], w1_ref[...], preferred_element_type=jnp.float32)
    h = jnp.maximum(h + b1, 0.0)

    # Layer 2: Linear + ReLU
    h = jnp.dot(h.astype(cdt), w2_ref[...], preferred_element_type=jnp.float32)
    h = jnp.maximum(h + b2, 0.0)

    # Layer 3: Linear + Hardswish  (x * relu6(x + 3) / 6)
    h = jnp.dot(h.astype(cdt), w3_ref[...], preferred_element_type=jnp.float32)
    h = h + b3
    h = h * jnp.clip(h + 3.0, 0.0, 6.0) * (1.0 / 6.0)

    # Layer 4: Linear (raw logits, no final activation — matches forward())
    h = jnp.dot(h.astype(cdt), w4_ref[...], preferred_element_type=jnp.float32)
    out_ref[...] = (h + b4).astype(out_ref.dtype)


@functools.partial(jax.jit, static_argnames=("action_dim", "batch_tile"))
def actor_forward(state, prepared, *, action_dim, batch_tile=256):
    """state: (B, state_dim) f32. prepared: dict from prepare_params()."""
    B, state_dim = state.shape
    w1, w2, w3, w4, b = (prepared["w1"], prepared["w2"], prepared["w3"],
                         prepared["w4"], prepared["b"])
    s_p, mid_p = w1.shape
    act_p = w4.shape[1]
    lmax = b.shape[1]
    cdt = w1.dtype

    # Pad batch up to the tile and features up to the padded state width.
    b_p = _round_up(B, batch_tile)
    x = jnp.pad(state, ((0, b_p - B), (0, s_p - state_dim))).astype(cdt)

    grid = (b_p // batch_tile,)
    full = lambda i: (0, 0)
    row = lambda i: (i, 0)

    out = pl.pallas_call(
        actor_kernel,
        out_shape=jax.ShapeDtypeStruct((b_p, act_p), jnp.float32),
        grid_spec=pl.GridSpec(
            grid=grid,
            in_specs=[
                pl.BlockSpec((batch_tile, s_p), row),   # state tile
                pl.BlockSpec((s_p, mid_p), full),       # w1
                pl.BlockSpec((mid_p, mid_p), full),     # w2
                pl.BlockSpec((mid_p, mid_p), full),     # w3
                pl.BlockSpec((mid_p, act_p), full),     # w4
                pl.BlockSpec((_SUBLANE, lmax), full),   # packed biases
            ],
            out_specs=pl.BlockSpec((batch_tile, act_p), row),
        ),
        compiler_params=pltpu.CompilerParams(
            dimension_semantics=("parallel",)),
    )(x, w1, w2, w3, w4, b)

    # Lane-dense padded output; slice back to the logical shape outside.
    return out[:B, :action_dim]


def init_actor_params(key, state_dim, mid_dim, action_dim):
    """Torch-like Linear init. Weights stored transposed: (in, out); bias (1, out)."""
    ks = jax.random.split(key, 8)

    def lin(kw, kb, fan_in, fan_out):
        bound = 1.0 / jnp.sqrt(fan_in)
        w = jax.random.uniform(kw, (fan_in, fan_out), jnp.float32, -bound, bound)
        b = jax.random.uniform(kb, (1, fan_out), jnp.float32, -bound, bound)
        return w, b

    w1, b1 = lin(ks[0], ks[1], state_dim, mid_dim)
    w2, b2 = lin(ks[2], ks[3], mid_dim, mid_dim)
    w3, b3 = lin(ks[4], ks[5], mid_dim, mid_dim)
    w4, b4 = lin(ks[6], ks[7], mid_dim, action_dim)
    return dict(w1=w1, b1=b1, w2=w2, b2=b2, w3=w3, b3=b3, w4=w4, b4=b4)


def prepare_params(p, compute_dtype=jnp.bfloat16):
    """Host-side, one-time: zero-pad all feature dims to 128, cast weights to the
    MXU compute dtype, and pack the four biases into a single (8, Lmax) f32 block."""
    state_dim, mid_dim = p["w1"].shape
    action_dim = p["w4"].shape[1]
    s_p = _round_up(state_dim, _LANE)
    mid_p = _round_up(mid_dim, _LANE)
    act_p = _round_up(action_dim, _LANE)
    lmax = max(mid_p, act_p)

    def pad2(w, r, c):
        return jnp.pad(w, ((0, r - w.shape[0]), (0, c - w.shape[1])))

    w1 = pad2(p["w1"], s_p, mid_p).astype(compute_dtype)
    w2 = pad2(p["w2"], mid_p, mid_p).astype(compute_dtype)
    w3 = pad2(p["w3"], mid_p, mid_p).astype(compute_dtype)
    w4 = pad2(p["w4"], mid_p, act_p).astype(compute_dtype)

    b = jnp.zeros((_SUBLANE, lmax), jnp.float32)
    b = b.at[0, :mid_dim].set(p["b1"].reshape(-1))
    b = b.at[1, :mid_dim].set(p["b2"].reshape(-1))
    b = b.at[2, :mid_dim].set(p["b3"].reshape(-1))
    b = b.at[3, :action_dim].set(p["b4"].reshape(-1))
    return dict(w1=w1, w2=w2, w3=w3, w4=w4, b=b)


def actor_forward_ref(state, p, compute_dtype=jnp.float32):
    """Pure-JAX reference (unpadded). compute_dtype=bf16 matches the kernel's MXU casts."""
    def dot(a, w):
        return jnp.dot(a.astype(compute_dtype), w.astype(compute_dtype),
                       preferred_element_type=jnp.float32)

    h = jnp.maximum(dot(state, p["w1"]) + p["b1"], 0.0)
    h = jnp.maximum(dot(h, p["w2"]) + p["b2"], 0.0)
    h = dot(h, p["w3"]) + p["b3"]
    h = h * jnp.clip(h + 3.0, 0.0, 6.0) / 6.0
    return dot(h, p["w4"]) + p["b4"]


if __name__ == "__main__":
    key = jax.random.PRNGKey(0)
    k_param, k_state = jax.random.split(key)

    batch = 8
    state_dim = 16
    mid_dim = 32
    action_dim = 4

    params = init_actor_params(k_param, state_dim, mid_dim, action_dim)
    prepared = prepare_params(params, compute_dtype=jnp.bfloat16)
    state = jax.random.normal(k_state, (batch, state_dim), jnp.float32)

    logits = actor_forward(state, prepared, action_dim=action_dim)
    logits = jax.block_until_ready(logits)
    assert logits.shape == (batch, action_dim)

    # Tight check against a reference that uses the same bf16-input / f32-accum casts.
    ref_matched = actor_forward_ref(state, params, compute_dtype=jnp.bfloat16)
    assert jnp.allclose(logits, ref_matched, atol=1e-4, rtol=1e-4), (
        float(jnp.max(jnp.abs(logits - ref_matched))))
    # Loose sanity check against the full-f32 reference (bf16 input rounding only).
    ref_f32 = actor_forward_ref(state, params, compute_dtype=jnp.float32)
    assert jnp.allclose(logits, ref_f32, atol=5e-2, rtol=5e-2), (
        float(jnp.max(jnp.abs(logits - ref_f32))))

    # TODO(synk): get_action / get_new_logprob_entropy / get_old_logprob
    # (softmax + Categorical sampling, log_prob, entropy) are stochastic /
    # host-level paths; forward() only is implemented as a kernel.
    print("KERNEL_OK")
</pallas_src>

<mosaic_0001>
module attributes {stable_mosaic.version = 11 : i64} {
  func.func @actor_kernel(%arg0: i32, %arg1: memref<256x128xbf16, #tpu.memory_space<vmem>>, %arg2: memref<128x128xbf16, #tpu.memory_space<vmem>>, %arg3: memref<128x128xbf16, #tpu.memory_space<vmem>>, %arg4: memref<128x128xbf16, #tpu.memory_space<vmem>>, %arg5: memref<128x128xbf16, #tpu.memory_space<vmem>>, %arg6: memref<8x128xf32, #tpu.memory_space<vmem>>, %arg7: memref<256x128xf32, #tpu.memory_space<vmem>>) attributes {dimension_semantics = [#tpu.dimension_semantics<parallel>], iteration_bounds = array<i64: 1>, scalar_prefetch = 0 : i64, scratch_operands = 0 : i64, tpu.core_type = #tpu.core_type<tc>, window_params = [{transform_indices = @transform_0, window_bounds = array<i64: 256, 128>}, {pipeline_mode = #tpu.pipeline_mode<synchronous>, transform_indices = @transform_1, window_bounds = array<i64: 128, 128>}, {pipeline_mode = #tpu.pipeline_mode<synchronous>, transform_indices = @transform_2, window_bounds = array<i64: 128, 128>}, {pipeline_mode = #tpu.pipeline_mode<synchronous>, transform_indices = @transform_3, window_bounds = array<i64: 128, 128>}, {pipeline_mode = #tpu.pipeline_mode<synchronous>, transform_indices = @transform_4, window_bounds = array<i64: 128, 128>}, {pipeline_mode = #tpu.pipeline_mode<synchronous>, transform_indices = @transform_5, window_bounds = array<i64: 8, 128>}, {transform_indices = @transform_6, window_bounds = array<i64: 256, 128>}]} {
    %c0 = arith.constant 0 : index
    %c0_0 = arith.constant 0 : index
    %0 = vector.load %arg6[%c0, %c0_0] : memref<8x128xf32, #tpu.memory_space<vmem>>, vector<8x128xf32>
    %1 = vector.extract_strided_slice %0 {offsets = [0, 0], sizes = [1, 128], strides = [1, 1]} : vector<8x128xf32> to vector<1x128xf32>
    %2 = vector.extract_strided_slice %0 {offsets = [1, 0], sizes = [1, 128], strides = [1, 1]} : vector<8x128xf32> to vector<1x128xf32>
    %3 = vector.extract_strided_slice %0 {offsets = [2, 0], sizes = [1, 128], strides = [1, 1]} : vector<8x128xf32> to vector<1x128xf32>
    %4 = vector.extract_strided_slice %0 {offsets = [3, 0], sizes = [1, 128], strides = [1, 1]} : vector<8x128xf32> to vector<1x128xf32>
    %c0_1 = arith.constant 0 : index
    %c0_2 = arith.constant 0 : index
    %5 = vector.load %arg1[%c0_1, %c0_2] : memref<256x128xbf16, #tpu.memory_space<vmem>>, vector<256x128xbf16>
    %c0_3 = arith.constant 0 : index
    %c0_4 = arith.constant 0 : index
    %6 = vector.load %arg2[%c0_3, %c0_4] : memref<128x128xbf16, #tpu.memory_space<vmem>>, vector<128x128xbf16>
    %cst = arith.constant dense<0.000000e+00> : vector<256x128xf32>
    %7 = tpu.matmul %5, %6, %cst {dimension_numbers = #tpu.dot_dimension_numbers<[1], [0], [0], [1], [0, 0, 1, 1], [], []>} : vector<256x128xbf16>, vector<128x128xbf16>, vector<256x128xf32> -> vector<256x128xf32>
    %8 = vector.broadcast %1 : vector<1x128xf32> to vector<256x128xf32>
    %9 = arith.addf %7, %8 : vector<256x128xf32>
    %cst_5 = arith.constant 0.000000e+00 : f32
    %10 = vector.broadcast %cst_5 : f32 to vector<256x128xf32>
    %11 = arith.maximumf %9, %10 : vector<256x128xf32>
    %12 = arith.truncf %11 : vector<256x128xf32> to vector<256x128xbf16>
    %c0_6 = arith.constant 0 : index
    %c0_7 = arith.constant 0 : index
    %13 = vector.load %arg3[%c0_6, %c0_7] : memref<128x128xbf16, #tpu.memory_space<vmem>>, vector<128x128xbf16>
    %cst_8 = arith.constant dense<0.000000e+00> : vector<256x128xf32>
    %14 = tpu.matmul %12, %13, %cst_8 {dimension_numbers = #tpu.dot_dimension_numbers<[1], [0], [0], [1], [0, 0, 1, 1], [], []>} : vector<256x128xbf16>, vector<128x128xbf16>, vector<256x128xf32> -> vector<256x128xf32>
    %15 = vector.broadcast %2 : vector<1x128xf32> to vector<256x128xf32>
    %16 = arith.addf %14, %15 : vector<256x128xf32>
    %cst_9 = arith.constant 0.000000e+00 : f32
    %17 = vector.broadcast %cst_9 : f32 to vector<256x128xf32>
    %18 = arith.maximumf %16, %17 : vector<256x128xf32>
    %19 = arith.truncf %18 : vector<256x128xf32> to vector<256x128xbf16>
    %c0_10 = arith.constant 0 : index
    %c0_11 = arith.constant 0 : index
    %20 = vector.load %arg4[%c0_10, %c0_11] : memref<128x128xbf16, #tpu.memory_space<vmem>>, vector<128x128xbf16>
    %cst_12 = arith.constant dense<0.000000e+00> : vector<256x128xf32>
    %21 = tpu.matmul %19, %20, %cst_12 {dimension_numbers = #tpu.dot_dimension_numbers<[1], [0], [0], [1], [0, 0, 1, 1], [], []>} : vector<256x128xbf16>, vector<128x128xbf16>, vector<256x128xf32> -> vector<256x128xf32>
    %22 = vector.broadcast %3 : vector<1x128xf32> to vector<256x128xf32>
    %23 = arith.addf %21, %22 : vector<256x128xf32>
    %cst_13 = arith.constant 3.000000e+00 : f32
    %24 = vector.broadcast %cst_13 : f32 to vector<256x128xf32>
    %25 = arith.addf %23, %24 : vector<256x128xf32>
    %cst_14 = arith.constant 0.000000e+00 : f32
    %cst_15 = arith.constant 6.000000e+00 : f32
    %26 = vector.broadcast %cst_14 : f32 to vector<256x128xf32>
    %27 = arith.maximumf %26, %25 : vector<256x128xf32>
    %28 = vector.broadcast %cst_15 : f32 to vector<256x128xf32>
    %29 = arith.minimumf %28, %27 : vector<256x128xf32>
    %30 = arith.mulf %23, %29 : vector<256x128xf32>
    %cst_16 = arith.constant 0.166666672 : f32
    %31 = vector.broadcast %cst_16 : f32 to vector<256x128xf32>
    %32 = arith.mulf %30, %31 : vector<256x128xf32>
    %33 = arith.truncf %32 : vector<256x128xf32> to vector<256x128xbf16>
    %c0_17 = arith.constant 0 : index
    %c0_18 = arith.constant 0 : index
    %34 = vector.load %arg5[%c0_17, %c0_18] : memref<128x128xbf16, #tpu.memory_space<vmem>>, vector<128x128xbf16>
    %cst_19 = arith.constant dense<0.000000e+00> : vector<256x128xf32>
    %35 = tpu.matmul %33, %34, %cst_19 {dimension_numbers = #tpu.dot_dimension_numbers<[1], [0], [0], [1], [0, 0, 1, 1], [], []>} : vector<256x128xbf16>, vector<128x128xbf16>, vector<256x128xf32> -> vector<256x128xf32>
    %36 = vector.broadcast %4 : vector<1x128xf32> to vector<256x128xf32>
    %37 = arith.addf %35, %36 : vector<256x128xf32>
    %c0_20 = arith.constant 0 : index
    %c0_21 = arith.constant 0 : index
    %38 = vector.load %arg7[%c0_20, %c0_21] : memref<256x128xf32, #tpu.memory_space<vmem>>, vector<256x128xf32>
    tpu.vector_store %arg7[%c0_20, %c0_21], %37 {strides = array<i32>} : memref<256x128xf32, #tpu.memory_space<vmem>>, vector<256x128xf32>,
    return
  }
  func.func @transform_0(%arg0: i32) -> (i32, i32) {
    %c0_i32 = arith.constant 0 : i32
    %c0_i32_0 = arith.constant 0 : i32
    return %arg0, %c0_i32 : i32, i32
  }
  func.func @transform_1(%arg0: i32) -> (i32, i32) {
    %c0_i32 = arith.constant 0 : i32
    %c0_i32_0 = arith.constant 0 : i32
    %c0_i32_1 = arith.constant 0 : i32
    return %c0_i32, %c0_i32_0 : i32, i32
  }
  func.func @transform_2(%arg0: i32) -> (i32, i32) {
    %c0_i32 = arith.constant 0 : i32
    %c0_i32_0 = arith.constant 0 : i32
    %c0_i32_1 = arith.constant 0 : i32
    return %c0_i32, %c0_i32_0 : i32, i32
  }
  func.func @transform_3(%arg0: i32) -> (i32, i32) {
    %c0_i32 = arith.constant 0 : i32
    %c0_i32_0 = arith.constant 0 : i32
    %c0_i32_1 = arith.constant 0 : i32
    return %c0_i32, %c0_i32_0 : i32, i32
  }
  func.func @transform_4(%arg0: i32) -> (i32, i32) {
    %c0_i32 = arith.constant 0 : i32
    %c0_i32_0 = arith.constant 0 : i32
    %c0_i32_1 = arith.constant 0 : i32
    return %c0_i32, %c0_i32_0 : i32, i32
  }
  func.func @transform_5(%arg0: i32) -> (i32, i32) {
    %c0_i32 = arith.constant 0 : i32
    %c0_i32_0 = arith.constant 0 : i32
    %c0_i32_1 = arith.constant 0 : i32
    return %c0_i32, %c0_i32_0 : i32, i32
  }
  func.func @transform_6(%arg0: i32) -> (i32, i32) {
    %c0_i32 = arith.constant 0 : i32
    %c0_i32_0 = arith.constant 0 : i32
    return %arg0, %c0_i32 : i32, i32
  }
}

</mosaic_0001>

<bundles_post_ra>
// kernel: actor_forward.1
= control target key start
LH: loop header
LB: loop body
LE: loop exit
PB: predicated region body
PF: predicated region fallthrough
CT: control target
= control target key end

     0   :  { %11 = vsyncpa [#allocation3], 0  ;;  %s1788_s0 = inlined_call_operand.vmem [shape: bf16[256,128], index: 0, kind: input, shape index: {}]   ;;  %s1789_s1 = inlined_call_operand.vmem [shape: bf16[128,128], index: 1, kind: input, shape index: {}]   ;;  %s1790_s2 = inlined_call_operand.vmem [shape: bf16[128,128], index: 2, kind: input, shape index: {}]   ;;  %s1791_s3 = inlined_call_operand.hbm [shape: bf16[128,128], index: 3, kind: input, shape index: {}]   ;;  %s1792_s4 = inlined_call_operand.hbm [shape: bf16[128,128], index: 4, kind: input, shape index: {}]   ;;  %s1793_s5 = inlined_call_operand.vmem [shape: f32[8,128], index: 5, kind: input, shape index: {}]   ;;  %s1794_s6 = inlined_call_operand.vmem [shape: f32[256,128], index: 6, kind: output, shape index: {}]  }
   0x1   :  { %s23_s23 = sshll.u32 %s1791_s3, 4  ;;  %s24_s23 = int_to_ptr.hbm [resolvable:$true] %s23_s23 }
   0x2   :  { %12 = vsyncpa [#allocation5], 0  ;;  %s1406_s24 = smov [#allocation2]   ;;  %s36_s28 = sshll.u32 %s1792_s4, 4  ;;  %s37_s28 = int_to_ptr.hbm [resolvable:$true] %s36_s28 }
   0x3   :  { %s25_s25 = sshll.u32 %s1406_s24, 4  ;;  %s1407_s29 = smov 64   ;;  %s26_s25 = int_to_ptr.vmem [resolvable:$true] %s25_s25 }
   0x4   :  { %s1408_s30 = smov 4   ;;  %s1409_s7 = smov [#allocation4]  }
   0x5   :  { %31 = dma.hbm_to_vmem [thread:$0]  %s24_s23, 1024, %s26_s25, [#allocation3], %s1407_s29, %s1407_s29, %s1408_s30  }
   0x6   :  { %s38_s8 = sshll.u32 %s1409_s7, 4  ;;  %s39_s8 = int_to_ptr.vmem [resolvable:$true] %s38_s8 }
   0x7   :  { %44 = dma.hbm_to_vmem [thread:$0]  %s37_s28, 1024, %s39_s8, [#allocation5], %s1407_s29, %s1407_s29, %s1408_s30  }
   0x8   :  { %1402 = dma.done.wait [#allocation3], 1024  }
   0x9   :  { %1403 = vsyncadd [#allocation3], 4294966272 }
   0xa   :  { %1404 = dma.done.wait [#allocation5], 1024  }
   0xb   :  { %1405 = vsyncadd [#allocation5], 4294966272  ;;  %v1325_v0 = vld [vmem:[%s1789_s1 + $0x38] sm:$0xff]  ;;  %v1324_v1 = vld [vmem:[%s1789_s1 + $0x30] sm:$0xff] }
   0xc   :  { %249 = vmatpush.bf16.msra.mxu0 %v1325_v0  ;;  %v1323_v2 = vld [vmem:[%s1789_s1 + $0x28] sm:$0xff]  ;;  %v1322_v3 = vld [vmem:[%s1789_s1 + $0x20] sm:$0xff]  ;;  %v1321_v4 = vld [vmem:[%s1789_s1 + $0x18] sm:$0xff] }
   0xd   :  { %v1320_v5 = vld [vmem:[%s1789_s1 + $0x10] sm:$0xff]  ;;  %v1319_v6 = vld [vmem:[%s1789_s1 + $0x8] sm:$0xff]  ;;  %v1318_v7 = vld [vmem:[%s1789_s1] sm:$0xff] }
   0xe   :  { %v1302_v8 = vld [vmem:[%s1788_s0] sm:$0xff]  ;;  %v1303_v9 = vld [vmem:[%s1788_s0 + $0x8] sm:$0xff]  ;;  %v1304_v10 = vld [vmem:[%s1788_s0 + $0x10] sm:$0xff] }
   0xf   :  { %v1305_v11 = vld [vmem:[%s1788_s0 + $0x18] sm:$0xff]  ;;  %v1306_v12 = vld [vmem:[%s1788_s0 + $0x20] sm:$0xff]  ;;  %v1307_v14 = vld [vmem:[%s1788_s0 + $0x28] sm:$0xff] }
  0x10   :  { %250 = vmatpush.bf16.msra.mxu0 %v1324_v1  ;;  %v1333_v13 = vld [vmem:[%s1790_s2 + $0x38] sm:$0xff]  ;;  %v1332_v15 = vld [vmem:[%s1790_s2 + $0x30] sm:$0xff]  ;;  %v1331_v16 = vld [vmem:[%s1790_s2 + $0x28] sm:$0xff] }
  0x11   :  { %451 = vmatpush.bf16.msra.mxu1 %v1333_v13  ;;  %v1330_v17 = vld [vmem:[%s1790_s2 + $0x20] sm:$0xff]  ;;  %v1329_v18 = vld [vmem:[%s1790_s2 + $0x18] sm:$0xff]  ;;  %v1308_v19 = vld [vmem:[%s1788_s0 + $0x30] sm:$0xff] }
  0x12   :  { %v1328_v20 = vld [vmem:[%s1790_s2 + $0x10] sm:$0xff]  ;;  %v1327_v21 = vld [vmem:[%s1790_s2 + $0x8] sm:$0xff]  ;;  %v1326_v22 = vld [vmem:[%s1790_s2] sm:$0xff] }
  0x13   :  { %v1309_v23 = vld [vmem:[%s1788_s0 + $0x38] sm:$0xff]  ;;  %v1310_v24 = vld [vmem:[%s1788_s0 + $0x40] sm:$0xff]  ;;  %v1311_v34 = vld [vmem:[%s1788_s0 + $0x48] sm:$0xff] }
  0x14   :  { %251 = vmatpush.bf16.msra.mxu0 %v1323_v2  ;;  %v1529_v25 = vld [vmem:[%s1793_s5] sm:$0xff]  ;;  %v1312_v42 = vld [vmem:[%s1788_s0 + $0x50] sm:$0xff]  ;;  %v1313_v50 = vld [vmem:[%s1788_s0 + $0x58] sm:$0xff] }
  0x15   :  { %452 = vmatpush.bf16.msra.mxu1 %v1332_v15  ;;  %v1532_v27 = vperm.slane %v1529_v25, 0  ;;  %v1314_v58 = vld [vmem:[%s1788_s0 + $0x60] sm:$0xff]  ;;  %v1315_v2 = vld [vmem:[%s1788_s0 + $0x68] sm:$0xff] }
  0x16   :  { %v1338_v15 = vld [vmem:[#allocation2 + $0x20] sm:$0xff] }
  0x18   :  { %252 = vmatpush.bf16.msra.mxu0 %v1322_v3 }
  0x19   :  { %453 = vmatpush.bf16.msra.mxu1 %v1331_v16 }
  0x1c   :  { %253 = vmatpush.bf16.msra.mxu0 %v1321_v4 }
  0x1d   :  { %454 = vmatpush.bf16.msra.mxu1 %v1330_v17 }
  0x20   :  { %254 = vmatpush.bf16.msra.mxu0 %v1320_v5 }
  0x21   :  { %455 = vmatpush.bf16.msra.mxu1 %v1329_v18 }
  0x24   :  { %255 = vmatpush.bf16.msra.mxu0 %v1319_v6 }
  0x25   :  { %456 = vmatpush.bf16.msra.mxu1 %v1328_v20 }
  0x28   :  { %256 = vmatpush.bf16.msra.mxu0 %v1318_v7  ;;  %v1341_v7 = vld [vmem:[#allocation2 + $0x38] sm:$0xff] }
  0x29   :  { %457 = vmatpush.bf16.msra.mxu1 %v1327_v21  ;;  %653 = vmatpush.bf16.msra.mxu2 %v1341_v7 }
  0x2b   :  { %257 = vmatmul.bf16.vlgmr.msra.gmra.mxu0 %v1302_v8 }
  0x2d   :  { %458 = vmatpush.bf16.msra.mxu1 %v1326_v22 }
  0x3b   :  { %262 = vmatmul.bf16.gmra.mxu0 %v1303_v9 }
  0x4b   :  { %267 = vmatmul.bf16.gmra.mxu0 %v1304_v10 }
  0x5b   :  { %272 = vmatmul.bf16.gmra.mxu0 %v1305_v11  ;;  %v1340_v11 = vld [vmem:[#allocation2 + $0x30] sm:$0xff] }
  0x5c   :  { %654 = vmatpush.bf16.msra.mxu2 %v1340_v11 }
  0x6b   :  { %277 = vmatmul.bf16.gmra.mxu0 %v1306_v12  ;;  %v1316_v12 = vld [vmem:[%s1788_s0 + $0x70] sm:$0xff] }
  0x7b   :  { %282 = vmatmul.bf16.gmra.mxu0 %v1307_v14  ;;  %v1339_v14 = vld [vmem:[#allocation2 + $0x28] sm:$0xff] }
  0x7c   :  { %655 = vmatpush.bf16.msra.mxu2 %v1339_v14 }
  0x80   :  { %656 = vmatpush.bf16.msra.mxu2 %v1338_v15 }
  0x8b   :  { %287 = vmatmul.bf16.gmra.mxu0 %v1308_v19  ;;  %v1337_v19 = vld [vmem:[#allocation2 + $0x18] sm:$0xff] }
  0x8c   :  { %657 = vmatpush.bf16.msra.mxu2 %v1337_v19 }
  0x9b   :  { %292 = vmatmul.bf16.gmra.mxu0 %v1309_v23  ;;  %v1336_v23 = vld [vmem:[#allocation2 + $0x10] sm:$0xff] }
  0x9c   :  { %658 = vmatpush.bf16.msra.mxu2 %v1336_v23 }
  0xa8   :  { %v258_v26 = vpop.f32.mrf.mxu0 }
  0xa9   :  { %v259_v28 = vadd.f32 %v258_v26, %v1532_v27 }
  0xab   :  { %297 = vmatmul.bf16.gmra.mxu0 %v1310_v24  ;;  %v338_v31 = vmax.f32 %v259_v28, 0.0  ;;  %v1317_v24 = vld [vmem:[%s1788_s0 + $0x78] sm:$0xff]  ;;  %v1335_v28 = vld [vmem:[#allocation2 + $0x8] sm:$0xff] }
  0xac   :  { %659 = vmatpush.bf16.msra.mxu2 %v1335_v28 }
  0xb0   :  { %v260_v29 = vpop.f32.mrf.mxu0 }
  0xb1   :  { %v261_v30 = vadd.f32 %v260_v29, %v1532_v27  ;;  %v1334_v29 = vld [vmem:[#allocation2] sm:$0xff] }
  0xb2   :  { %660 = vmatpush.bf16.msra.mxu2 %v1334_v29 }
  0xb3   :  { %v339_v32 = vmax.f32 %v261_v30, 0.0 }
  0xb5   :  { %v370_v33 = vpack.c.bf16 %v339_v32, %v338_v31 }
  0xb7   :  { %459 = vmatmul.bf16.vlgmr.msra.gmra.mxu1 %v370_v33 }
  0xb8   :  { %v263_v35 = vpop.f32.mrf.mxu0 }
  0xb9   :  { %v264_v36 = vadd.f32 %v263_v35, %v1532_v27 }
  0xbb   :  { %302 = vmatmul.bf16.gmra.mxu0 %v1311_v34  ;;  %v340_v39 = vmax.f32 %v264_v36, 0.0 }
  0xc0   :  { %v265_v37 = vpop.f32.mrf.mxu0 }
  0xc1   :  { %v266_v38 = vadd.f32 %v265_v37, %v1532_v27 }
  0xc3   :  { %v341_v40 = vmax.f32 %v266_v38, 0.0 }
  0xc5   :  { %v371_v41 = vpack.c.bf16 %v341_v40, %v340_v39 }
  0xc7   :  { %464 = vmatmul.bf16.gmra.mxu1 %v371_v41 }
  0xc8   :  { %v268_v43 = vpop.f32.mrf.mxu0 }
  0xc9   :  { %v269_v44 = vadd.f32 %v268_v43, %v1532_v27 }
  0xcb   :  { %307 = vmatmul.bf16.gmra.mxu0 %v1312_v42  ;;  %v342_v47 = vmax.f32 %v269_v44, 0.0  ;;  %v1574_v44 = vperm.slane %v1529_v25, 1 }
  0xd0   :  { %v270_v45 = vpop.f32.mrf.mxu0 }
  0xd1   :  { %v271_v46 = vadd.f32 %v270_v45, %v1532_v27 }
  0xd3   :  { %v343_v48 = vmax.f32 %v271_v46, 0.0 }
  0xd5   :  { %v372_v49 = vpack.c.bf16 %v343_v48, %v342_v47 }
  0xd7   :  { %469 = vmatmul.bf16.gmra.mxu1 %v372_v49 }
  0xd8   :  { %v273_v51 = vpop.f32.mrf.mxu0 }
  0xd9   :  { %v274_v52 = vadd.f32 %v273_v51, %v1532_v27 }
  0xdb   :  { %312 = vmatmul.bf16.gmra.mxu0 %v1313_v50  ;;  %v344_v55 = vmax.f32 %v274_v52, 0.0 }
  0xe0   :  { %v275_v53 = vpop.f32.mrf.mxu0 }
  0xe1   :  { %v276_v54 = vadd.f32 %v275_v53, %v1532_v27 }
  0xe3   :  { %v345_v56 = vmax.f32 %v276_v54, 0.0 }
  0xe5   :  { %v373_v57 = vpack.c.bf16 %v345_v56, %v344_v55 }
  0xe7   :  { %474 = vmatmul.bf16.gmra.mxu1 %v373_v57 }
  0xe8   :  { %v278_v59 = vpop.f32.mrf.mxu0 }
  0xe9   :  { %v279_v60 = vadd.f32 %v278_v59, %v1532_v27 }
  0xeb   :  { %317 = vmatmul.bf16.gmra.mxu0 %v1314_v58  ;;  %v346_v63 = vmax.f32 %v279_v60, 0.0 }
  0xf0   :  { %v280_v61 = vpop.f32.mrf.mxu0 }
  0xf1   :  { %v281_v62 = vadd.f32 %v280_v61, %v1532_v27 }
  0xf3   :  { %v347_v0 = vmax.f32 %v281_v62, 0.0 }
  0xf5   :  { %v374_v1 = vpack.c.bf16 %v347_v0, %v346_v63 }
  0xf7   :  { %479 = vmatmul.bf16.gmra.mxu1 %v374_v1 }
  0xf8   :  { %v283_v3 = vpop.f32.mrf.mxu0 }
  0xf9   :  { %v284_v4 = vadd.f32 %v283_v3, %v1532_v27 }
  0xfb   :  { %322 = vmatmul.bf16.gmra.mxu0 %v1315_v2  ;;  %v348_v8 = vmax.f32 %v284_v4, 0.0 }
 0x100   :  { %v285_v5 = vpop.f32.mrf.mxu0 }
 0x101   :  { %v286_v6 = vadd.f32 %v285_v5, %v1532_v27 }
 0x103   :  { %v349_v9 = vmax.f32 %v286_v6, 0.0 }
 0x105   :  { %v375_v10 = vpack.c.bf16 %v349_v9, %v348_v8 }
 0x107   :  { %484 = vmatmul.bf16.gmra.mxu1 %v375_v10 }
 0x108   :  { %v288_v13 = vpop.f32.mrf.mxu0 }
 0x109   :  { %v289_v16 = vadd.f32 %v288_v13, %v1532_v27 }
 0x10b   :  { %327 = vmatmul.bf16.gmra.mxu0 %v1316_v12  ;;  %v350_v20 = vmax.f32 %v289_v16, 0.0 }
 0x110   :  { %v290_v17 = vpop.f32.mrf.mxu0 }
 0x111   :  { %v291_v18 = vadd.f32 %v290_v17, %v1532_v27 }
 0x113   :  { %v351_v21 = vmax.f32 %v291_v18, 0.0 }
 0x115   :  { %v376_v22 = vpack.c.bf16 %v351_v21, %v350_v20 }
 0x117   :  { %489 = vmatmul.bf16.gmra.mxu1 %v376_v22 }
 0x118   :  { %v293_v26 = vpop.f32.mrf.mxu0 }
 0x119   :  { %v294_v30 = vadd.f32 %v293_v26, %v1532_v27 }
 0x11b   :  { %332 = vmatmul.bf16.gmra.mxu0 %v1317_v24  ;;  %v352_v33 = vmax.f32 %v294_v30, 0.0 }
 0x120   :  { %v295_v31 = vpop.f32.mrf.mxu0 }
 0x121   :  { %v296_v32 = vadd.f32 %v295_v31, %v1532_v27 }
 0x123   :  { %v353_v34 = vmax.f32 %v296_v32, 0.0 }
 0x125   :  { %v377_v35 = vpack.c.bf16 %v353_v34, %v352_v33 }
 0x127   :  { %494 = vmatmul.bf16.gmra.mxu1 %v377_v35 }
 0x128   :  { %v298_v36 = vpop.f32.mrf.mxu0 }
 0x129   :  { %v299_v37 = vadd.f32 %v298_v36, %v1532_v27 }
 0x12b   :  { %v354_v40 = vmax.f32 %v299_v37, 0.0 }
 0x130   :  { %v300_v38 = vpop.f32.mrf.mxu0 }
 0x131   :  { %v301_v39 = vadd.f32 %v300_v38, %v1532_v27 }
 0x133   :  { %v355_v41 = vmax.f32 %v301_v39, 0.0 }
 0x134   :  { %v460_v42 = vpop.f32.mrf.mxu1 }
 0x135   :  { %v378_v43 = vpack.c.bf16 %v355_v41, %v354_v40  ;;  %v461_v46 = vadd.f32 %v460_v42, %v1574_v44 }
 0x137   :  { %499 = vmatmul.bf16.gmra.mxu1 %v378_v43  ;;  %v540_v49 = vmax.f32 %v461_v46, 0.0 }
 0x138   :  { %v303_v45 = vpop.f32.mrf.mxu0 }
 0x139   :  { %v304_v50 = vadd.f32 %v303_v45, %v1532_v27 }
 0x13b   :  { %v356_v55 = vmax.f32 %v304_v50, 0.0 }
 0x13c   :  { %v462_v47 = vpop.f32.mrf.mxu1 }
 0x13d   :  { %v463_v48 = vadd.f32 %v462_v47, %v1574_v44 }
 0x13f   :  { %v541_v51 = vmax.f32 %v463_v48, 0.0 }
 0x140   :  { %v305_v52 = vpop.f32.mrf.mxu0 }
 0x141   :  { %v306_v53 = vadd.f32 %v305_v52, %v1532_v27  ;;  %v572_v54 = vpack.c.bf16 %v541_v51, %v540_v49 }
 0x143   :  { %v357_v56 = vmax.f32 %v306_v53, 0.0  ;;  %661 = vmatmul.bf16.vlgmr.msra.gmra.mxu2 %v572_v54 }
 0x144   :  { %v465_v57 = vpop.f32.mrf.mxu1 }
 0x145   :  { %v379_v58 = vpack.c.bf16 %v357_v56, %v356_v55  ;;  %v466_v60 = vadd.f32 %v465_v57, %v1574_v44 }
 0x147   :  { %504 = vmatmul.bf16.gmra.mxu1 %v379_v58  ;;  %v542_v63 = vmax.f32 %v466_v60, 0.0 }
 0x148   :  { %v308_v59 = vpop.f32.mrf.mxu0 }
 0x149   :  { %v309_v0 = vadd.f32 %v308_v59, %v1532_v27 }
 0x14b   :  { %v358_v5 = vmax.f32 %v309_v0, 0.0 }
 0x14c   :  { %v467_v61 = vpop.f32.mrf.mxu1 }
 0x14d   :  { %v468_v62 = vadd.f32 %v467_v61, %v1574_v44 }
 0x14f   :  { %v543_v1 = vmax.f32 %v468_v62, 0.0 }
 0x150   :  { %v310_v2 = vpop.f32.mrf.mxu0 }
 0x151   :  { %v311_v3 = vadd.f32 %v310_v2, %v1532_v27  ;;  %v573_v4 = vpack.c.bf16 %v543_v1, %v542_v63 }
 0x153   :  { %v359_v6 = vmax.f32 %v311_v3, 0.0  ;;  %666 = vmatmul.bf16.gmra.mxu2 %v573_v4 }
 0x154   :  { %v470_v7 = vpop.f32.mrf.mxu1 }
 0x155   :  { %v380_v8 = vpack.c.bf16 %v359_v6, %v358_v5  ;;  %v471_v10 = vadd.f32 %v470_v7, %v1574_v44  ;;  %v1349_v7 = vld [vmem:[#allocation4 + $0x38] sm:$0xff] }
 0x156   :  { %983 = vmatpush.bf16.msra.mxu3 %v1349_v7 }
 0x157   :  { %509 = vmatmul.bf16.gmra.mxu1 %v380_v8  ;;  %v544_v13 = vmax.f32 %v471_v10, 0.0 }
 0x158   :  { %v313_v9 = vpop.f32.mrf.mxu0 }
 0x159   :  { %v314_v14 = vadd.f32 %v313_v9, %v1532_v27 }
 0x15b   :  { %v360_v19 = vmax.f32 %v314_v14, 0.0 }
 0x15c   :  { %v472_v11 = vpop.f32.mrf.mxu1 }
 0x15d   :  { %v473_v12 = vadd.f32 %v472_v11, %v1574_v44 }
 0x15f   :  { %v545_v15 = vmax.f32 %v473_v12, 0.0  ;;  %v1348_v12 = vld [vmem:[#allocation4 + $0x30] sm:$0xff] }
 0x160   :  { %v315_v16 = vpop.f32.mrf.mxu0  ;;  %984 = vmatpush.bf16.msra.mxu3 %v1348_v12 }
 0x161   :  { %v316_v17 = vadd.f32 %v315_v16, %v1532_v27  ;;  %v574_v18 = vpack.c.bf16 %v545_v15, %v544_v13 }
 0x163   :  { %v361_v20 = vmax.f32 %v316_v17, 0.0  ;;  %671 = vmatmul.bf16.gmra.mxu2 %v574_v18 }
 0x164   :  { %v475_v21 = vpop.f32.mrf.mxu1 }
 0x165   :  { %v381_v22 = vpack.c.bf16 %v361_v20, %v360_v19  ;;  %v476_v24 = vadd.f32 %v475_v21, %v1574_v44  ;;  %v1347_v19 = vld [vmem:[#allocation4 + $0x28] sm:$0xff]  ;;  %v1346_v21 = vld [vmem:[#allocation4 + $0x20] sm:$0xff] }
 0x166   :  { %985 = vmatpush.bf16.msra.mxu3 %v1347_v19 }
 0x167   :  { %514 = vmatmul.bf16.gmra.mxu1 %v381_v22  ;;  %v546_v29 = vmax.f32 %v476_v24, 0.0  ;;  %v1345_v24 = vld [vmem:[#allocation4 + $0x18] sm:$0xff] }
 0x168   :  { %v318_v23 = vpop.f32.mrf.mxu0 }
 0x169   :  { %v319_v30 = vadd.f32 %v318_v23, %v1532_v27 }
 0x16a   :  { %986 = vmatpush.bf16.msra.mxu3 %v1346_v21 }
 0x16b   :  { %v362_v35 = vmax.f32 %v319_v30, 0.0 }
 0x16c   :  { %v477_v26 = vpop.f32.mrf.mxu1 }
 0x16d   :  { %v478_v28 = vadd.f32 %v477_v26, %v1574_v44 }
 0x16e   :  { %987 = vmatpush.bf16.msra.mxu3 %v1345_v24 }
 0x16f   :  { %v547_v31 = vmax.f32 %v478_v28, 0.0 }
 0x170   :  { %v320_v32 = vpop.f32.mrf.mxu0 }
 0x171   :  { %v321_v33 = vadd.f32 %v320_v32, %v1532_v27  ;;  %v575_v34 = vpack.c.bf16 %v547_v31, %v546_v29  ;;  %v1344_v29 = vld [vmem:[#allocation4 + $0x10] sm:$0xff]  ;;  %v1343_v32 = vld [vmem:[#allocation4 + $0x8] sm:$0xff] }
 0x172   :  { %988 = vmatpush.bf16.msra.mxu3 %v1344_v29 }
 0x173   :  { %v363_v36 = vmax.f32 %v321_v33, 0.0  ;;  %676 = vmatmul.bf16.gmra.mxu2 %v575_v34  ;;  %v1342_v33 = vld [vmem:[#allocation4] sm:$0xff] }
 0x174   :  { %v480_v37 = vpop.f32.mrf.mxu1 }
 0x175   :  { %v382_v38 = vpack.c.bf16 %v363_v36, %v362_v35  ;;  %v481_v40 = vadd.f32 %v480_v37, %v1574_v44 }
 0x176   :  { %989 = vmatpush.bf16.msra.mxu3 %v1343_v32 }
 0x177   :  { %519 = vmatmul.bf16.gmra.mxu1 %v382_v38  ;;  %v548_v43 = vmax.f32 %v481_v40, 0.0  ;;  %v1609_v40 = vperm.slane %v1529_v25, 2 }
 0x178   :  { %v323_v39 = vpop.f32.mrf.mxu0 }
 0x179   :  { %v324_v45 = vadd.f32 %v323_v39, %v1532_v27 }
 0x17a   :  { %990 = vmatpush.bf16.msra.mxu3 %v1342_v33 }
 0x17b   :  { %v364_v50 = vmax.f32 %v324_v45, 0.0 }
 0x17c   :  { %v482_v41 = vpop.f32.mrf.mxu1 }
 0x17d   :  { %v483_v42 = vadd.f32 %v482_v41, %v1574_v44 }
 0x17f   :  { %v549_v46 = vmax.f32 %v483_v42, 0.0 }
 0x180   :  { %v325_v47 = vpop.f32.mrf.mxu0 }
 0x181   :  { %v326_v48 = vadd.f32 %v325_v47, %v1532_v27  ;;  %v576_v49 = vpack.c.bf16 %v549_v46, %v548_v43 }
 0x183   :  { %v365_v51 = vmax.f32 %v326_v48, 0.0  ;;  %681 = vmatmul.bf16.gmra.mxu2 %v576_v49 }
 0x184   :  { %v485_v52 = vpop.f32.mrf.mxu1 }
 0x185   :  { %v383_v53 = vpack.c.bf16 %v365_v51, %v364_v50  ;;  %v486_v55 = vadd.f32 %v485_v52, %v1574_v44 }
 0x187   :  { %524 = vmatmul.bf16.gmra.mxu1 %v383_v53  ;;  %v550_v58 = vmax.f32 %v486_v55, 0.0 }
 0x188   :  { %v328_v54 = vpop.f32.mrf.mxu0 }
 0x189   :  { %v329_v59 = vadd.f32 %v328_v54, %v1532_v27 }
 0x18b   :  { %v366_v0 = vmax.f32 %v329_v59, 0.0 }
 0x18c   :  { %v487_v56 = vpop.f32.mrf.mxu1 }
 0x18d   :  { %v488_v57 = vadd.f32 %v487_v56, %v1574_v44 }
 0x18f   :  { %v551_v60 = vmax.f32 %v488_v57, 0.0 }
 0x190   :  { %v330_v61 = vpop.f32.mrf.mxu0 }
 0x191   :  { %v331_v62 = vadd.f32 %v330_v61, %v1532_v27  ;;  %v577_v63 = vpack.c.bf16 %v551_v60, %v550_v58 }
 0x193   :  { %v367_v1 = vmax.f32 %v331_v62, 0.0  ;;  %686 = vmatmul.bf16.gmra.mxu2 %v577_v63 }
 0x194   :  { %v490_v2 = vpop.f32.mrf.mxu1 }
 0x195   :  { %v384_v3 = vpack.c.bf16 %v367_v1, %v366_v0  ;;  %v491_v5 = vadd.f32 %v490_v2, %v1574_v44 }
 0x197   :  { %529 = vmatmul.bf16.gmra.mxu1 %v384_v3  ;;  %v552_v9 = vmax.f32 %v491_v5, 0.0 }
 0x198   :  { %v333_v4 = vpop.f32.mrf.mxu0 }
 0x199   :  { %v334_v10 = vadd.f32 %v333_v4, %v1532_v27 }
 0x19b   :  { %v368_v16 = vmax.f32 %v334_v10, 0.0 }
 0x19c   :  { %v492_v6 = vpop.f32.mrf.mxu1 }
 0x19d   :  { %v493_v8 = vadd.f32 %v492_v6, %v1574_v44 }
 0x19f   :  { %v553_v11 = vmax.f32 %v493_v8, 0.0 }
 0x1a0   :  { %v335_v13 = vpop.f32.mrf.mxu0 }
 0x1a1   :  { %v336_v14 = vadd.f32 %v335_v13, %v1532_v27  ;;  %v578_v15 = vpack.c.bf16 %v553_v11, %v552_v9 }
 0x1a3   :  { %v369_v17 = vmax.f32 %v336_v14, 0.0  ;;  %691 = vmatmul.bf16.gmra.mxu2 %v578_v15 }
 0x1a4   :  { %v495_v18 = vpop.f32.mrf.mxu1 }
 0x1a5   :  { %v385_v20 = vpack.c.bf16 %v369_v17, %v368_v16  ;;  %v496_v22 = vadd.f32 %v495_v18, %v1574_v44 }
 0x1a7   :  { %534 = vmatmul.bf16.gmra.mxu1 %v385_v20  ;;  %v554_v27 = vmax.f32 %v496_v22, 0.0 }
 0x1ac   :  { %v497_v23 = vpop.f32.mrf.mxu1 }
 0x1ad   :  { %v498_v26 = vadd.f32 %v497_v23, %v1574_v44 }
 0x1af   :  { %v555_v28 = vmax.f32 %v498_v26, 0.0 }
 0x1b1   :  { %v579_v30 = vpack.c.bf16 %v555_v28, %v554_v27 }
 0x1b3   :  { %696 = vmatmul.bf16.gmra.mxu2 %v579_v30 }
 0x1b4   :  { %v500_v31 = vpop.f32.mrf.mxu1 }
 0x1b5   :  { %v501_v34 = vadd.f32 %v500_v31, %v1574_v44 }
 0x1b7   :  { %v556_v37 = vmax.f32 %v501_v34, 0.0 }
 0x1bc   :  { %v502_v35 = vpop.f32.mrf.mxu1 }
 0x1bd   :  { %v503_v36 = vadd.f32 %v502_v35, %v1574_v44 }
 0x1bf   :  { %v557_v38 = vmax.f32 %v503_v36, 0.0 }
 0x1c1   :  { %v580_v39 = vpack.c.bf16 %v557_v38, %v556_v37 }
 0x1c3   :  { %701 = vmatmul.bf16.gmra.mxu2 %v580_v39 }
 0x1c4   :  { %v505_v41 = vpop.f32.mrf.mxu1 }
 0x1c5   :  { %v506_v46 = vadd.f32 %v505_v41, %v1574_v44 }
 0x1c6   :  { %v662_v42 = vpop.f32.mrf.mxu2 }
 0x1c7   :  { %v663_v43 = vadd.f32 %v662_v42, %v1609_v40  ;;  %v558_v51 = vmax.f32 %v506_v46, 0.0 }
 0x1c9   :  { %v742_v45 = vadd.f32 3.0, %v663_v43 }
 0x1cb   :  { %v774_v48 = vmax.f32 %v742_v45, 0.0 }
 0x1cc   :  { %v507_v47 = vpop.f32.mrf.mxu1 }
 0x1cd   :  { %v508_v49 = vadd.f32 %v507_v47, %v1574_v44  ;;  %v806_v54 = vmin.f32 %v774_v48, 6.0 }
 0x1ce   :  { %v664_v50 = vpop.f32.mrf.mxu2 }
 0x1cf   :  { %v559_v52 = vmax.f32 %v508_v49, 0.0  ;;  %v665_v53 = vadd.f32 %v664_v50, %v1609_v40  ;;  %v838_v59 = vmul.f32 %v806_v54, %v663_v43 }
 0x1d1   :  { %v743_v55 = vadd.f32 3.0, %v665_v53  ;;  %v581_v56 = vpack.c.bf16 %v559_v52, %v558_v51  ;;  %v870_v0 = vmul.f32 0.16666667, %v838_v59 }
 0x1d3   :  { %v775_v57 = vmax.f32 %v743_v55, 0.0  ;;  %706 = vmatmul.bf16.gmra.mxu2 %v581_v56 }
 0x1d4   :  { %v510_v58 = vpop.f32.mrf.mxu1 }
 0x1d5   :  { %v807_v60 = vmin.f32 %v775_v57, 6.0  ;;  %v511_v3 = vadd.f32 %v510_v58, %v1574_v44 }
 0x1d6   :  { %v667_v61 = vpop.f32.mrf.mxu2 }
 0x1d7   :  { %v839_v62 = vmul.f32 %v807_v60, %v665_v53  ;;  %v668_v63 = vadd.f32 %v667_v61, %v1609_v40  ;;  %v560_v9 = vmax.f32 %v511_v3, 0.0 }
 0x1d9   :  { %v744_v1 = vadd.f32 3.0, %v668_v63  ;;  %v871_v2 = vmul.f32 0.16666667, %v839_v62 }
 0x1db   :  { %v902_v4 = vpack.c.bf16 %v871_v2, %v870_v0  ;;  %v776_v6 = vmax.f32 %v744_v1, 0.0 }
 0x1dc   :  { %v512_v5 = vpop.f32.mrf.mxu1 }
 0x1dd   :  { %v513_v7 = vadd.f32 %v512_v5, %v1574_v44  ;;  %991 = vmatmul.bf16.vlgmr.msra.gmra.mxu3 %v902_v4  ;;  %v808_v12 = vmin.f32 %v776_v6, 6.0 }
 0x1de   :  { %v669_v8 = vpop.f32.mrf.mxu2 }
 0x1df   :  { %v561_v10 = vmax.f32 %v513_v7, 0.0  ;;  %v670_v11 = vadd.f32 %v669_v8, %v1609_v40  ;;  %v840_v17 = vmul.f32 %v808_v12, %v668_v63 }
 0x1e1   :  { %v745_v13 = vadd.f32 3.0, %v670_v11  ;;  %v582_v14 = vpack.c.bf16 %v561_v10, %v560_v9  ;;  %v872_v22 = vmul.f32 0.16666667, %v840_v17 }
 0x1e3   :  { %v777_v15 = vmax.f32 %v745_v13, 0.0  ;;  %711 = vmatmul.bf16.gmra.mxu2 %v582_v14 }
 0x1e4   :  { %v515_v16 = vpop.f32.mrf.mxu1 }
 0x1e5   :  { %v809_v18 = vmin.f32 %v777_v15, 6.0  ;;  %v516_v26 = vadd.f32 %v515_v16, %v1574_v44 }
 0x1e6   :  { %v672_v19 = vpop.f32.mrf.mxu2 }
 0x1e7   :  { %v841_v20 = vmul.f32 %v809_v18, %v670_v11  ;;  %v673_v21 = vadd.f32 %v672_v19, %v1609_v40  ;;  %v562_v32 = vmax.f32 %v516_v26, 0.0 }
 0x1e9   :  { %v746_v23 = vadd.f32 3.0, %v673_v21  ;;  %v873_v24 = vmul.f32 0.16666667, %v841_v20 }
 0x1eb   :  { %v903_v27 = vpack.c.bf16 %v873_v24, %v872_v22  ;;  %v778_v29 = vmax.f32 %v746_v23, 0.0 }
 0x1ec   :  { %v517_v28 = vpop.f32.mrf.mxu1 }
 0x1ed   :  { %v518_v30 = vadd.f32 %v517_v28, %v1574_v44  ;;  %996 = vmatmul.bf16.gmra.mxu3 %v903_v27  ;;  %v810_v35 = vmin.f32 %v778_v29, 6.0 }
 0x1ee   :  { %v674_v31 = vpop.f32.mrf.mxu2 }
 0x1ef   :  { %v563_v33 = vmax.f32 %v518_v30, 0.0  ;;  %v675_v34 = vadd.f32 %v674_v31, %v1609_v40  ;;  %v842_v41 = vmul.f32 %v810_v35, %v673_v21 }
 0x1f1   :  { %v747_v36 = vadd.f32 3.0, %v675_v34  ;;  %v583_v37 = vpack.c.bf16 %v563_v33, %v562_v32  ;;  %v874_v47 = vmul.f32 0.16666667, %v842_v41 }
 0x1f3   :  { %v779_v38 = vmax.f32 %v747_v36, 0.0  ;;  %716 = vmatmul.bf16.gmra.mxu2 %v583_v37 }
 0x1f4   :  { %v520_v39 = vpop.f32.mrf.mxu1 }
 0x1f5   :  { %v811_v42 = vmin.f32 %v779_v38, 6.0  ;;  %v521_v50 = vadd.f32 %v520_v39, %v1574_v44 }
 0x1f6   :  { %v677_v43 = vpop.f32.mrf.mxu2 }
 0x1f7   :  { %v843_v45 = vmul.f32 %v811_v42, %v675_v34  ;;  %v678_v46 = vadd.f32 %v677_v43, %v1609_v40  ;;  %v564_v56 = vmax.f32 %v521_v50, 0.0 }
 0x1f9   :  { %v748_v48 = vadd.f32 3.0, %v678_v46  ;;  %v875_v49 = vmul.f32 0.16666667, %v843_v45 }
 0x1fb   :  { %v904_v51 = vpack.c.bf16 %v875_v49, %v874_v47  ;;  %v780_v53 = vmax.f32 %v748_v48, 0.0 }
 0x1fc   :  { %v522_v52 = vpop.f32.mrf.mxu1 }
 0x1fd   :  { %v523_v54 = vadd.f32 %v522_v52, %v1574_v44  ;;  %1001 = vmatmul.bf16.gmra.mxu3 %v904_v51  ;;  %v812_v59 = vmin.f32 %v780_v53, 6.0 }
 0x1fe   :  { %v679_v55 = vpop.f32.mrf.mxu2 }
 0x1ff   :  { %v565_v57 = vmax.f32 %v523_v54, 0.0  ;;  %v680_v58 = vadd.f32 %v679_v55, %v1609_v40  ;;  %v844_v0 = vmul.f32 %v812_v59, %v678_v46 }
 0x201   :  { %v584_v60 = vpack.c.bf16 %v565_v57, %v564_v56  ;;  %v749_v61 = vadd.f32 3.0, %v680_v58  ;;  %v876_v5 = vmul.f32 0.16666667, %v844_v0 }
 0x203   :  { %v781_v62 = vmax.f32 %v749_v61, 0.0  ;;  %721 = vmatmul.bf16.gmra.mxu2 %v584_v60 }
 0x204   :  { %v525_v63 = vpop.f32.mrf.mxu1 }
 0x205   :  { %v813_v1 = vmin.f32 %v781_v62, 6.0  ;;  %v526_v8 = vadd.f32 %v525_v63, %v1574_v44 }
 0x206   :  { %v682_v2 = vpop.f32.mrf.mxu2 }
 0x207   :  { %v845_v3 = vmul.f32 %v813_v1, %v680_v58  ;;  %v683_v4 = vadd.f32 %v682_v2, %v1609_v40  ;;  %v566_v14 = vmax.f32 %v526_v8, 0.0 }
 0x209   :  { %v750_v6 = vadd.f32 3.0, %v683_v4  ;;  %v877_v7 = vmul.f32 0.16666667, %v845_v3 }
 0x20b   :  { %v905_v9 = vpack.c.bf16 %v877_v7, %v876_v5  ;;  %v782_v11 = vmax.f32 %v750_v6, 0.0 }
 0x20c   :  { %v527_v10 = vpop.f32.mrf.mxu1 }
 0x20d   :  { %v528_v12 = vadd.f32 %v527_v10, %v1574_v44  ;;  %1006 = vmatmul.bf16.gmra.mxu3 %v905_v9  ;;  %v814_v17 = vmin.f32 %v782_v11, 6.0 }
 0x20e   :  { %v684_v13 = vpop.f32.mrf.mxu2 }
 0x20f   :  { %v567_v15 = vmax.f32 %v528_v12, 0.0  ;;  %v685_v16 = vadd.f32 %v684_v13, %v1609_v40  ;;  %v846_v22 = vmul.f32 %v814_v17, %v683_v4 }
 0x211   :  { %v585_v18 = vpack.c.bf16 %v567_v15, %v566_v14  ;;  %v751_v19 = vadd.f32 3.0, %v685_v16  ;;  %v878_v28 = vmul.f32 0.16666667, %v846_v22 }
 0x213   :  { %v783_v20 = vmax.f32 %v751_v19, 0.0  ;;  %726 = vmatmul.bf16.gmra.mxu2 %v585_v18 }
 0x214   :  { %v530_v21 = vpop.f32.mrf.mxu1 }
 0x215   :  { %v815_v23 = vmin.f32 %v783_v20, 6.0  ;;  %v531_v31 = vadd.f32 %v530_v21, %v1574_v44 }
 0x216   :  { %v687_v24 = vpop.f32.mrf.mxu2 }
 0x217   :  { %v847_v26 = vmul.f32 %v815_v23, %v685_v16  ;;  %v688_v27 = vadd.f32 %v687_v24, %v1609_v40  ;;  %v568_v37 = vmax.f32 %v531_v31, 0.0 }
 0x219   :  { %v879_v29 = vmul.f32 0.16666667, %v847_v26  ;;  %v752_v30 = vadd.f32 3.0, %v688_v27 }
 0x21b   :  { %v906_v32 = vpack.c.bf16 %v879_v29, %v878_v28  ;;  %v784_v34 = vmax.f32 %v752_v30, 0.0 }
 0x21c   :  { %v532_v33 = vpop.f32.mrf.mxu1 }
 0x21d   :  { %v533_v35 = vadd.f32 %v532_v33, %v1574_v44  ;;  %1011 = vmatmul.bf16.gmra.mxu3 %v906_v32  ;;  %v816_v41 = vmin.f32 %v784_v34, 6.0 }
 0x21e   :  { %v689_v36 = vpop.f32.mrf.mxu2 }
 0x21f   :  { %v569_v38 = vmax.f32 %v533_v35, 0.0  ;;  %v690_v39 = vadd.f32 %v689_v36, %v1609_v40  ;;  %v848_v47 = vmul.f32 %v816_v41, %v688_v27 }
 0x221   :  { %v586_v42 = vpack.c.bf16 %v569_v38, %v568_v37  ;;  %v753_v43 = vadd.f32 3.0, %v690_v39  ;;  %v880_v52 = vmul.f32 0.16666667, %v848_v47 }
 0x223   :  { %v785_v45 = vmax.f32 %v753_v43, 0.0  ;;  %731 = vmatmul.bf16.gmra.mxu2 %v586_v42 }
 0x224   :  { %v535_v46 = vpop.f32.mrf.mxu1 }
 0x225   :  { %v817_v48 = vmin.f32 %v785_v45, 6.0  ;;  %v536_v55 = vadd.f32 %v535_v46, %v1574_v44  ;;  %v1645_v46 = vperm.slane %v1529_v25, 3 }
 0x226   :  { %v692_v49 = vpop.f32.mrf.mxu2 }
 0x227   :  { %v849_v50 = vmul.f32 %v817_v48, %v690_v39  ;;  %v693_v51 = vadd.f32 %v692_v49, %v1609_v40  ;;  %v570_v61 = vmax.f32 %v536_v55, 0.0 }
 0x229   :  { %v881_v53 = vmul.f32 0.16666667, %v849_v50  ;;  %v754_v54 = vadd.f32 3.0, %v693_v51 }
 0x22b   :  { %v907_v56 = vpack.c.bf16 %v881_v53, %v880_v52  ;;  %v786_v58 = vmax.f32 %v754_v54, 0.0 }
 0x22c   :  { %v537_v57 = vpop.f32.mrf.mxu1 }
 0x22d   :  { %v538_v59 = vadd.f32 %v537_v57, %v1574_v44  ;;  %1016 = vmatmul.bf16.gmra.mxu3 %v907_v56  ;;  %v818_v0 = vmin.f32 %v786_v58, 6.0 }
 0x22e   :  { %v694_v60 = vpop.f32.mrf.mxu2 }
 0x22f   :  { %v571_v62 = vmax.f32 %v538_v59, 0.0  ;;  %v695_v63 = vadd.f32 %v694_v60, %v1609_v40  ;;  %v850_v4 = vmul.f32 %v818_v0, %v693_v51 }
 0x231   :  { %v587_v1 = vpack.c.bf16 %v571_v62, %v570_v61  ;;  %v755_v2 = vadd.f32 3.0, %v695_v63  ;;  %v882_v9 = vmul.f32 0.16666667, %v850_v4 }
 0x233   :  { %v787_v3 = vmax.f32 %v755_v2, 0.0  ;;  %736 = vmatmul.bf16.gmra.mxu2 %v587_v1 }
 0x235   :  { %v819_v5 = vmin.f32 %v787_v3, 6.0 }
 0x236   :  { %v697_v6 = vpop.f32.mrf.mxu2 }
 0x237   :  { %v851_v7 = vmul.f32 %v819_v5, %v695_v63  ;;  %v698_v8 = vadd.f32 %v697_v6, %v1609_v40 }
 0x239   :  { %v883_v10 = vmul.f32 0.16666667, %v851_v7  ;;  %v756_v44 = vadd.f32 3.0, %v698_v8 }
 0x23b   :  { %v908_v11 = vpack.c.bf16 %v883_v10, %v882_v9  ;;  %v788_v12 = vmax.f32 %v756_v44, 0.0 }
 0x23d   :  { %1021 = vmatmul.bf16.gmra.mxu3 %v908_v11  ;;  %v820_v15 = vmin.f32 %v788_v12, 6.0 }
 0x23e   :  { %v699_v13 = vpop.f32.mrf.mxu2 }
 0x23f   :  { %v700_v14 = vadd.f32 %v699_v13, %v1609_v40  ;;  %v852_v18 = vmul.f32 %v820_v15, %v698_v8 }
 0x241   :  { %v757_v16 = vadd.f32 3.0, %v700_v14  ;;  %v884_v23 = vmul.f32 0.16666667, %v852_v18 }
 0x243   :  { %v789_v17 = vmax.f32 %v757_v16, 0.0 }
 0x245   :  { %v821_v19 = vmin.f32 %v789_v17, 6.0 }
 0x246   :  { %v702_v20 = vpop.f32.mrf.mxu2 }
 0x247   :  { %v853_v21 = vmul.f32 %v821_v19, %v700_v14  ;;  %v703_v22 = vadd.f32 %v702_v20, %v1609_v40 }
 0x249   :  { %v885_v24 = vmul.f32 0.16666667, %v853_v21  ;;  %v758_v26 = vadd.f32 3.0, %v703_v22 }
 0x24b   :  { %v909_v27 = vpack.c.bf16 %v885_v24, %v884_v23  ;;  %v790_v28 = vmax.f32 %v758_v26, 0.0 }
 0x24d   :  { %1026 = vmatmul.bf16.gmra.mxu3 %v909_v27  ;;  %v822_v31 = vmin.f32 %v790_v28, 6.0 }
 0x24e   :  { %v704_v29 = vpop.f32.mrf.mxu2 }
 0x24f   :  { %v705_v30 = vadd.f32 %v704_v29, %v1609_v40  ;;  %v854_v34 = vmul.f32 %v822_v31, %v703_v22 }
 0x251   :  { %v759_v32 = vadd.f32 3.0, %v705_v30  ;;  %v886_v39 = vmul.f32 0.16666667, %v854_v34 }
 0x253   :  { %v791_v33 = vmax.f32 %v759_v32, 0.0 }
 0x255   :  { %v823_v35 = vmin.f32 %v791_v33, 6.0 }
 0x256   :  { %v707_v36 = vpop.f32.mrf.mxu2 }
 0x257   :  { %v855_v37 = vmul.f32 %v823_v35, %v705_v30  ;;  %v708_v38 = vadd.f32 %v707_v36, %v1609_v40 }
 0x259   :  { %v887_v41 = vmul.f32 0.16666667, %v855_v37  ;;  %v760_v42 = vadd.f32 3.0, %v708_v38 }
 0x25b   :  { %v910_v43 = vpack.c.bf16 %v887_v41, %v886_v39  ;;  %v792_v45 = vmax.f32 %v760_v42, 0.0 }
 0x25d   :  { %1031 = vmatmul.bf16.gmra.mxu3 %v910_v43  ;;  %v824_v50 = vmin.f32 %v792_v45, 6.0 }
 0x25e   :  { %v709_v47 = vpop.f32.mrf.mxu2 }
 0x25f   :  { %v710_v48 = vadd.f32 %v709_v47, %v1609_v40  ;;  %v856_v54 = vmul.f32 %v824_v50, %v708_v38 }
 0x260   :  { %v992_v49 = vpop.f32.mrf.mxu3 }
 0x261   :  { %v761_v51 = vadd.f32 3.0, %v710_v48  ;;  %v993_v52 = vadd.f32 %v992_v49, %v1645_v46  ;;  %v888_v59 = vmul.f32 0.16666667, %v856_v54 }
 0x263   :  { %v793_v53 = vmax.f32 %v761_v51, 0.0  ;;  %1072 = vst [vmem:[%s1794_s6] sm:$0xff] %v993_v52 }
 0x265   :  { %v825_v55 = vmin.f32 %v793_v53, 6.0 }
 0x266   :  { %v712_v56 = vpop.f32.mrf.mxu2 }
 0x267   :  { %v857_v57 = vmul.f32 %v825_v55, %v710_v48  ;;  %v713_v25 = vadd.f32 %v712_v56, %v1609_v40 }
 0x268   :  { %v994_v58 = vpop.f32.mrf.mxu3 }
 0x269   :  { %v889_v60 = vmul.f32 0.16666667, %v857_v57  ;;  %v762_v61 = vadd.f32 3.0, %v713_v25  ;;  %v995_v62 = vadd.f32 %v994_v58, %v1645_v46 }
 0x26b   :  { %1073 = vst [vmem:[%s1794_s6 + $0x8] sm:$0xff] %v995_v62  ;;  %v911_v63 = vpack.c.bf16 %v889_v60, %v888_v59  ;;  %v794_v0 = vmax.f32 %v762_v61, 0.0 }
 0x26d   :  { %1036 = vmatmul.bf16.gmra.mxu3 %v911_v63  ;;  %v826_v4 = vmin.f32 %v794_v0, 6.0 }
 0x26e   :  { %v714_v1 = vpop.f32.mrf.mxu2 }
 0x26f   :  { %v715_v2 = vadd.f32 %v714_v1, %v1609_v40  ;;  %v858_v8 = vmul.f32 %v826_v4, %v713_v25 }
 0x270   :  { %v997_v3 = vpop.f32.mrf.mxu3 }
 0x271   :  { %v763_v5 = vadd.f32 3.0, %v715_v2  ;;  %v998_v6 = vadd.f32 %v997_v3, %v1645_v46  ;;  %v890_v13 = vmul.f32 0.16666667, %v858_v8 }
 0x273   :  { %v795_v7 = vmax.f32 %v763_v5, 0.0  ;;  %1074 = vst [vmem:[%s1794_s6 + $0x10] sm:$0xff] %v998_v6 }
 0x275   :  { %v827_v9 = vmin.f32 %v795_v7, 6.0 }
 0x276   :  { %v717_v10 = vpop.f32.mrf.mxu2 }
 0x277   :  { %v859_v44 = vmul.f32 %v827_v9, %v715_v2  ;;  %v718_v11 = vadd.f32 %v717_v10, %v1609_v40 }
 0x278   :  { %v999_v12 = vpop.f32.mrf.mxu3 }
 0x279   :  { %v891_v14 = vmul.f32 0.16666667, %v859_v44  ;;  %v764_v15 = vadd.f32 3.0, %v718_v11  ;;  %v1000_v16 = vadd.f32 %v999_v12, %v1645_v46 }
 0x27b   :  { %1075 = vst [vmem:[%s1794_s6 + $0x18] sm:$0xff] %v1000_v16  ;;  %v912_v17 = vpack.c.bf16 %v891_v14, %v890_v13  ;;  %v796_v18 = vmax.f32 %v764_v15, 0.0 }
 0x27d   :  { %1041 = vmatmul.bf16.gmra.mxu3 %v912_v17  ;;  %v828_v22 = vmin.f32 %v796_v18, 6.0 }
 0x27e   :  { %v719_v19 = vpop.f32.mrf.mxu2 }
 0x27f   :  { %v720_v20 = vadd.f32 %v719_v19, %v1609_v40  ;;  %v860_v27 = vmul.f32 %v828_v22, %v718_v11 }
 0x280   :  { %v1002_v21 = vpop.f32.mrf.mxu3 }
 0x281   :  { %v765_v23 = vadd.f32 3.0, %v720_v20  ;;  %v1003_v24 = vadd.f32 %v1002_v21, %v1645_v46  ;;  %v892_v33 = vmul.f32 0.16666667, %v860_v27 }
 0x283   :  { %v797_v26 = vmax.f32 %v765_v23, 0.0  ;;  %1076 = vst [vmem:[%s1794_s6 + $0x20] sm:$0xff] %v1003_v24 }
 0x285   :  { %v829_v28 = vmin.f32 %v797_v26, 6.0 }
 0x286   :  { %v722_v29 = vpop.f32.mrf.mxu2 }
 0x287   :  { %v861_v30 = vmul.f32 %v829_v28, %v720_v20  ;;  %v723_v31 = vadd.f32 %v722_v29, %v1609_v40 }
 0x288   :  { %v1004_v32 = vpop.f32.mrf.mxu3 }
 0x289   :  { %v893_v34 = vmul.f32 0.16666667, %v861_v30  ;;  %v766_v35 = vadd.f32 3.0, %v723_v31  ;;  %v1005_v36 = vadd.f32 %v1004_v32, %v1645_v46 }
 0x28b   :  { %1077 = vst [vmem:[%s1794_s6 + $0x28] sm:$0xff] %v1005_v36  ;;  %v913_v37 = vpack.c.bf16 %v893_v34, %v892_v33  ;;  %v798_v38 = vmax.f32 %v766_v35, 0.0 }
 0x28d   :  { %1046 = vmatmul.bf16.gmra.mxu3 %v913_v37  ;;  %v830_v43 = vmin.f32 %v798_v38, 6.0 }
 0x28e   :  { %v724_v39 = vpop.f32.mrf.mxu2 }
 0x28f   :  { %v725_v41 = vadd.f32 %v724_v39, %v1609_v40  ;;  %v862_v49 = vmul.f32 %v830_v43, %v723_v31 }
 0x290   :  { %v1007_v42 = vpop.f32.mrf.mxu3 }
 0x291   :  { %v767_v45 = vadd.f32 3.0, %v725_v41  ;;  %v1008_v47 = vadd.f32 %v1007_v42, %v1645_v46  ;;  %v894_v55 = vmul.f32 0.16666667, %v862_v49 }
 0x293   :  { %v799_v48 = vmax.f32 %v767_v45, 0.0  ;;  %1078 = vst [vmem:[%s1794_s6 + $0x30] sm:$0xff] %v1008_v47 }
 0x295   :  { %v831_v50 = vmin.f32 %v799_v48, 6.0 }
 0x296   :  { %v727_v51 = vpop.f32.mrf.mxu2 }
 0x297   :  { %v863_v52 = vmul.f32 %v831_v50, %v725_v41  ;;  %v728_v53 = vadd.f32 %v727_v51, %v1609_v40 }
 0x298   :  { %v1009_v54 = vpop.f32.mrf.mxu3 }
 0x299   :  { %v895_v56 = vmul.f32 0.16666667, %v863_v52  ;;  %v768_v57 = vadd.f32 3.0, %v728_v53  ;;  %v1010_v25 = vadd.f32 %v1009_v54, %v1645_v46 }
 0x29b   :  { %1079 = vst [vmem:[%s1794_s6 + $0x38] sm:$0xff] %v1010_v25  ;;  %v914_v58 = vpack.c.bf16 %v895_v56, %v894_v55  ;;  %v800_v59 = vmax.f32 %v768_v57, 0.0 }
 0x29d   :  { %1051 = vmatmul.bf16.gmra.mxu3 %v914_v58  ;;  %v832_v63 = vmin.f32 %v800_v59, 6.0 }
 0x29e   :  { %v729_v60 = vpop.f32.mrf.mxu2 }
 0x29f   :  { %v730_v61 = vadd.f32 %v729_v60, %v1609_v40  ;;  %v864_v3 = vmul.f32 %v832_v63, %v728_v53 }
 0x2a0   :  { %v1012_v62 = vpop.f32.mrf.mxu3 }
 0x2a1   :  { %v769_v0 = vadd.f32 3.0, %v730_v61  ;;  %v1013_v1 = vadd.f32 %v1012_v62, %v1645_v46  ;;  %v896_v9 = vmul.f32 0.16666667, %v864_v3 }
 0x2a3   :  { %v801_v2 = vmax.f32 %v769_v0, 0.0  ;;  %1080 = vst [vmem:[%s1794_s6 + $0x40] sm:$0xff] %v1013_v1 }
 0x2a5   :  { %v833_v4 = vmin.f32 %v801_v2, 6.0 }
 0x2a6   :  { %v732_v5 = vpop.f32.mrf.mxu2 }
 0x2a7   :  { %v865_v6 = vmul.f32 %v833_v4, %v730_v61  ;;  %v733_v7 = vadd.f32 %v732_v5, %v1609_v40 }
 0x2a8   :  { %v1014_v8 = vpop.f32.mrf.mxu3 }
 0x2a9   :  { %v897_v10 = vmul.f32 0.16666667, %v865_v6  ;;  %v770_v44 = vadd.f32 3.0, %v733_v7  ;;  %v1015_v11 = vadd.f32 %v1014_v8, %v1645_v46 }
 0x2ab   :  { %1081 = vst [vmem:[%s1794_s6 + $0x48] sm:$0xff] %v1015_v11  ;;  %v915_v12 = vpack.c.bf16 %v897_v10, %v896_v9  ;;  %v802_v13 = vmax.f32 %v770_v44, 0.0 }
 0x2ad   :  { %1056 = vmatmul.bf16.gmra.mxu3 %v915_v12  ;;  %v834_v17 = vmin.f32 %v802_v13, 6.0 }
 0x2ae   :  { %v734_v14 = vpop.f32.mrf.mxu2 }
 0x2af   :  { %v735_v15 = vadd.f32 %v734_v14, %v1609_v40  ;;  %v866_v21 = vmul.f32 %v834_v17, %v733_v7 }
 0x2b0   :  { %v1017_v16 = vpop.f32.mrf.mxu3 }
 0x2b1   :  { %v771_v18 = vadd.f32 3.0, %v735_v15  ;;  %v1018_v19 = vadd.f32 %v1017_v16, %v1645_v46  ;;  %v898_v28 = vmul.f32 0.16666667, %v866_v21 }
 0x2b3   :  { %v803_v20 = vmax.f32 %v771_v18, 0.0  ;;  %1082 = vst [vmem:[%s1794_s6 + $0x50] sm:$0xff] %v1018_v19 }
 0x2b5   :  { %v835_v22 = vmin.f32 %v803_v20, 6.0 }
 0x2b6   :  { %v737_v23 = vpop.f32.mrf.mxu2 }
 0x2b7   :  { %v867_v24 = vmul.f32 %v835_v22, %v735_v15  ;;  %v738_v26 = vadd.f32 %v737_v23, %v1609_v40 }
 0x2b8   :  { %v1019_v27 = vpop.f32.mrf.mxu3 }
 0x2b9   :  { %v899_v29 = vmul.f32 0.16666667, %v867_v24  ;;  %v772_v30 = vadd.f32 3.0, %v738_v26  ;;  %v1020_v31 = vadd.f32 %v1019_v27, %v1645_v46 }
 0x2bb   :  { %1083 = vst [vmem:[%s1794_s6 + $0x58] sm:$0xff] %v1020_v31  ;;  %v916_v32 = vpack.c.bf16 %v899_v29, %v898_v28  ;;  %v804_v33 = vmax.f32 %v772_v30, 0.0 }
 0x2bd   :  { %1061 = vmatmul.bf16.gmra.mxu3 %v916_v32  ;;  %v836_v37 = vmin.f32 %v804_v33, 6.0 }
 0x2be   :  { %v739_v34 = vpop.f32.mrf.mxu2 }
 0x2bf   :  { %v740_v35 = vadd.f32 %v739_v34, %v1609_v40  ;;  %v868_v42 = vmul.f32 %v836_v37, %v738_v26 }
 0x2c0   :  { %v1022_v36 = vpop.f32.mrf.mxu3 }
 0x2c1   :  { %v773_v38 = vadd.f32 3.0, %v740_v35  ;;  %v1023_v39 = vadd.f32 %v1022_v36, %v1645_v46  ;;  %v900_v48 = vmul.f32 0.16666667, %v868_v42 }
 0x2c3   :  { %v805_v41 = vmax.f32 %v773_v38, 0.0  ;;  %1084 = vst [vmem:[%s1794_s6 + $0x60] sm:$0xff] %v1023_v39 }
 0x2c5   :  { %v837_v43 = vmin.f32 %v805_v41, 6.0 }
 0x2c7   :  { %v869_v45 = vmul.f32 %v837_v43, %v740_v35 }
 0x2c8   :  { %v1024_v47 = vpop.f32.mrf.mxu3 }
 0x2c9   :  { %v901_v49 = vmul.f32 0.16666667, %v869_v45  ;;  %v1025_v50 = vadd.f32 %v1024_v47, %v1645_v46 }
 0x2cb   :  { %1085 = vst [vmem:[%s1794_s6 + $0x68] sm:$0xff] %v1025_v50  ;;  %v917_v40 = vpack.c.bf16 %v901_v49, %v900_v48 }
 0x2cd   :  { %1066 = vmatmul.bf16.gmra.mxu3 %v917_v40 }
 0x2d0   :  { %v1027_v51 = vpop.f32.mrf.mxu3 }
 0x2d1   :  { %v1028_v52 = vadd.f32 %v1027_v51, %v1645_v46 }
 0x2d3   :  { %1086 = vst [vmem:[%s1794_s6 + $0x70] sm:$0xff] %v1028_v52 }
 0x2d8   :  { %v1029_v53 = vpop.f32.mrf.mxu3 }
 0x2d9   :  { %v1030_v54 = vadd.f32 %v1029_v53, %v1645_v46 }
 0x2db   :  { %1087 = vst [vmem:[%s1794_s6 + $0x78] sm:$0xff] %v1030_v54 }
 0x2e0   :  { %v1032_v55 = vpop.f32.mrf.mxu3 }
 0x2e1   :  { %v1033_v56 = vadd.f32 %v1032_v55, %v1645_v46 }
 0x2e3   :  { %1088 = vst [vmem:[%s1794_s6 + $0x80] sm:$0xff] %v1033_v56 }
 0x2e8   :  { %v1034_v57 = vpop.f32.mrf.mxu3 }
 0x2e9   :  { %v1035_v25 = vadd.f32 %v1034_v57, %v1645_v46 }
 0x2eb   :  { %1089 = vst [vmem:[%s1794_s6 + $0x88] sm:$0xff] %v1035_v25 }
 0x2f0   :  { %v1037_v58 = vpop.f32.mrf.mxu3 }
 0x2f1   :  { %v1038_v59 = vadd.f32 %v1037_v58, %v1645_v46 }
 0x2f3   :  { %1090 = vst [vmem:[%s1794_s6 + $0x90] sm:$0xff] %v1038_v59 }
 0x2f8   :  { %v1039_v60 = vpop.f32.mrf.mxu3 }
 0x2f9   :  { %v1040_v61 = vadd.f32 %v1039_v60, %v1645_v46 }
 0x2fb   :  { %1091 = vst [vmem:[%s1794_s6 + $0x98] sm:$0xff] %v1040_v61 }
 0x300   :  { %v1042_v62 = vpop.f32.mrf.mxu3 }
 0x301   :  { %v1043_v63 = vadd.f32 %v1042_v62, %v1645_v46 }
 0x303   :  { %1092 = vst [vmem:[%s1794_s6 + $0xa0] sm:$0xff] %v1043_v63 }
 0x308   :  { %v1044_v0 = vpop.f32.mrf.mxu3 }
 0x309   :  { %v1045_v1 = vadd.f32 %v1044_v0, %v1645_v46 }
 0x30b   :  { %1093 = vst [vmem:[%s1794_s6 + $0xa8] sm:$0xff] %v1045_v1 }
 0x310   :  { %v1047_v2 = vpop.f32.mrf.mxu3 }
 0x311   :  { %v1048_v3 = vadd.f32 %v1047_v2, %v1645_v46 }
 0x313   :  { %1094 = vst [vmem:[%s1794_s6 + $0xb0] sm:$0xff] %v1048_v3 }
 0x318   :  { %v1049_v4 = vpop.f32.mrf.mxu3 }
 0x319   :  { %v1050_v5 = vadd.f32 %v1049_v4, %v1645_v46 }
 0x31b   :  { %1095 = vst [vmem:[%s1794_s6 + $0xb8] sm:$0xff] %v1050_v5 }
 0x320   :  { %v1052_v6 = vpop.f32.mrf.mxu3 }
 0x321   :  { %v1053_v7 = vadd.f32 %v1052_v6, %v1645_v46 }
 0x323   :  { %1096 = vst [vmem:[%s1794_s6 + $0xc0] sm:$0xff] %v1053_v7 }
 0x328   :  { %v1054_v8 = vpop.f32.mrf.mxu3 }
 0x329   :  { %v1055_v9 = vadd.f32 %v1054_v8, %v1645_v46 }
 0x32b   :  { %1097 = vst [vmem:[%s1794_s6 + $0xc8] sm:$0xff] %v1055_v9 }
 0x330   :  { %v1057_v10 = vpop.f32.mrf.mxu3 }
 0x331   :  { %v1058_v44 = vadd.f32 %v1057_v10, %v1645_v46 }
 0x333   :  { %1098 = vst [vmem:[%s1794_s6 + $0xd0] sm:$0xff] %v1058_v44 }
 0x338   :  { %v1059_v11 = vpop.f32.mrf.mxu3 }
 0x339   :  { %v1060_v12 = vadd.f32 %v1059_v11, %v1645_v46 }
 0x33b   :  { %1099 = vst [vmem:[%s1794_s6 + $0xd8] sm:$0xff] %v1060_v12 }
 0x340   :  { %v1062_v13 = vpop.f32.mrf.mxu3 }
 0x341   :  { %v1063_v14 = vadd.f32 %v1062_v13, %v1645_v46 }
 0x343   :  { %1100 = vst [vmem:[%s1794_s6 + $0xe0] sm:$0xff] %v1063_v14 }
 0x348   :  { %v1064_v15 = vpop.f32.mrf.mxu3 }
 0x349   :  { %v1065_v16 = vadd.f32 %v1064_v15, %v1645_v46 }
 0x34b   :  { %1101 = vst [vmem:[%s1794_s6 + $0xe8] sm:$0xff] %v1065_v16 }
 0x350   :  { %v1067_v17 = vpop.f32.mrf.mxu3 }
 0x351   :  { %v1068_v18 = vadd.f32 %v1067_v17, %v1645_v46 }
 0x353   :  { %1102 = vst [vmem:[%s1794_s6 + $0xf0] sm:$0xff] %v1068_v18 }
 0x358   :  { %v1069_v19 = vpop.f32.mrf.mxu3 }
 0x359   :  { %v1070_v20 = vadd.f32 %v1069_v19, %v1645_v46 }
 0x35b   :  { %1103 = vst [vmem:[%s1794_s6 + $0xf8] sm:$0xff] %v1070_v20 }
 0x35c   :  { %1108 = vsyncpa [#allocation3], 1 }
 0x35d   :  { %1109 = vsyncpa [#allocation5], 1 }

</bundles_post_ra>
